<compile_context>
chip_gen: v7x
topology: tpu7x:2x2x1
jax: 0.10.0
libtpu: 0.0.40
codegen_flags: <defaults>
</compile_context>

<pallas_src>
import jax
import jax.numpy as jnp
from jax.experimental import pallas as pl
from jax.experimental.pallas import tpu as pltpu

_EPS = 1e-05
_TARGET_BLOCK_BYTES = 4 << 20   # ~4 MiB blocks amortize per-grid-step overhead
_MAX_BLOCK_BYTES = 8 << 20      # hard cap: 2x(in)+2x(out) buffers must fit v7x VMEM
_MAX_LANE_TILE = 8192
_VMEM_CAP = 48 << 20            # headroom under v7x's 64 MiB physical VMEM


# ------------------------------- kernels ------------------------------------


def _bn_channel_kernel(p_ref, x_ref, o_ref):
    # p_ref: (2, c_tile, 1) f32 -- [0] = scale, [1] = shift (precomputed).
    # x_ref / o_ref: (1, c_tile, hw_tile) -- C on sublanes, H*W on lanes.
    scale = p_ref[0]                          # (c_tile, 1)
    shift = p_ref[1]                          # (c_tile, 1)
    x = x_ref[...].astype(jnp.float32)        # (1, c_tile, hw_tile)
    o_ref[...] = (x * scale[None] + shift[None]).astype(o_ref.dtype)


def _bn_flat_kernel(p_ref, x_ref, o_ref):
    # p_ref: (2, l_tile) f32 -- row 0 = scale, row 1 = shift (expanded to C*HW).
    # x_ref / o_ref: (n_tile, l_tile) -- N on sublanes, C*H*W on lanes (dense).
    scale = p_ref[0:1, :]                     # (1, l_tile)
    shift = p_ref[1:2, :]                     # (1, l_tile)
    x = x_ref[...].astype(jnp.float32)
    o_ref[...] = (x * scale + shift).astype(o_ref.dtype)


# ------------------------------ tile picking ---------------------------------


def _halve_tile(extent, step):
    """Smallest multiple of `step` covering half of `extent`; < extent when
    extent >= 2*step -- used to guarantee >= 2 parallel blocks (v7x: 2 TCs)."""
    return max(step, (-(-(extent // 2) // step)) * step)


def _pick_channel_tiles(N, C, HW, itemsize):
    """Tiles for the (N, C, H*W) layout. Requires HW >= 128."""
    # Lane axis: always a multiple of 128; pl.cdiv masks only the tail block.
    max_lane = HW if HW % 128 == 0 else (HW // 128) * 128
    hw_tile = min(max_lane, _MAX_LANE_TILE)

    # Sublane axis: align to dtype packing (8 f32 / 16 bf16 / 32 int8-fp8) when
    # possible, else multiples of 8, else the (8,128) rule forces full extent.
    packing = max(8, 32 // itemsize)
    if C % packing == 0:
        c_step = packing
    elif C % 8 == 0:
        c_step = 8
    else:
        c_step = None

    if c_step is None:
        c_tile = C
        # Cap block bytes by shrinking the (128-multiple) lane tile.
        while c_tile * hw_tile * itemsize > _MAX_BLOCK_BYTES and hw_tile > 128:
            hw_tile = max(128, ((hw_tile // 2) // 128) * 128)
    else:
        want_c = max(c_step, _TARGET_BLOCK_BYTES // (hw_tile * itemsize))
        c_tile = int(min(C, (want_c // c_step) * c_step))

    # Ensure >= 2 parallel blocks so both v7x TensorCores get work.
    if N * pl.cdiv(C, c_tile) * pl.cdiv(HW, hw_tile) < 2:
        if hw_tile >= HW and HW >= 256:
            hw_tile = _halve_tile(HW, 128)
        elif c_step is not None and C >= 2 * c_step:
            c_tile = _halve_tile(C, c_step)
    return c_tile, hw_tile


def _pick_flat_tiles(N, L, itemsize):
    """Tiles for the flattened (N, C*H*W) layout (small-HW path)."""
    if L < 128:
        l_tile = L                                     # tiny layer; full extent
    else:
        max_lane = L if L % 128 == 0 else (L // 128) * 128
        l_tile = min(max_lane, _MAX_LANE_TILE)

    if N % 8 == 0:
        want_n = max(8, _TARGET_BLOCK_BYTES // (l_tile * itemsize))
        n_tile = int(min(N, (want_n // 8) * 8))
    else:
        n_tile = N
        while (n_tile * l_tile * itemsize > _MAX_BLOCK_BYTES
               and l_tile > 128 and l_tile % 128 == 0):
            l_tile = max(128, ((l_tile // 2) // 128) * 128)

    if pl.cdiv(N, n_tile) * pl.cdiv(L, l_tile) < 2:
        if l_tile >= L and L >= 256:
            l_tile = _halve_tile(L, 128)
        elif n_tile >= N and N >= 16 and N % 8 == 0:
            n_tile = _halve_tile(N, 8)
    return n_tile, l_tile


def _vmem_limit(block_bytes, param_bytes):
    # Resident: double-buffered input + output blocks + params + headroom.
    need = 4 * block_bytes + 2 * param_bytes + (4 << 20)
    return int(min(max(need, 16 << 20), _VMEM_CAP))


# -------------------------------- wrapper -------------------------------------


@jax.jit
def frozen_batch_norm_2d(x_nchw, weight, bias, running_mean, running_var):
    """FrozenBatchNorm2d forward. x_nchw: (N, C, H, W); params: (C,)."""
    N, C, H, W = x_nchw.shape
    HW = H * W
    dtype = x_nchw.dtype
    itemsize = jnp.dtype(dtype).itemsize

    # Per-channel affine in f32 (2*C elements -- negligible).
    w = weight.astype(jnp.float32)
    b = bias.astype(jnp.float32)
    rm = running_mean.astype(jnp.float32)
    rv = running_var.astype(jnp.float32)
    scale = w * jax.lax.rsqrt(rv + _EPS)
    shift = b - rm * scale

    if HW >= 128:
        # --- Channel-on-sublane path: (N, C, H*W), H*W on lanes. -------------
        x3d = x_nchw.reshape(N, C, HW)           # contiguous view, no transpose
        params = jnp.stack([scale, shift], axis=0).reshape(2, C, 1)
        c_tile, hw_tile = _pick_channel_tiles(N, C, HW, itemsize)
        block_bytes = c_tile * hw_tile * itemsize
        grid = (N, pl.cdiv(C, c_tile), pl.cdiv(HW, hw_tile))

        out3d = pl.pallas_call(
            _bn_channel_kernel,
            out_shape=jax.ShapeDtypeStruct((N, C, HW), dtype),
            grid_spec=pltpu.PrefetchScalarGridSpec(
                num_scalar_prefetch=0,
                grid=grid,
                in_specs=[
                    pl.BlockSpec((2, c_tile, 1), lambda n, j, k: (0, j, 0)),
                    pl.BlockSpec((1, c_tile, hw_tile),
                                 lambda n, j, k: (n, j, k)),
                ],
                out_specs=pl.BlockSpec((1, c_tile, hw_tile),
                                       lambda n, j, k: (n, j, k)),
            ),
            compiler_params=pltpu.CompilerParams(
                dimension_semantics=("parallel", "parallel", "parallel"),
                vmem_limit_bytes=_vmem_limit(block_bytes, 8 * C)),
        )(params, x3d)
        return out3d.reshape(N, C, H, W)

    # --- Small-HW path (HW < 128): flatten to (N, C*HW), lanes stay dense. ---
    L = C * HW
    x2d = x_nchw.reshape(N, L)
    params = jnp.stack([jnp.repeat(scale, HW), jnp.repeat(shift, HW)], axis=0)
    n_tile, l_tile = _pick_flat_tiles(N, L, itemsize)
    block_bytes = n_tile * l_tile * itemsize
    grid = (pl.cdiv(N, n_tile), pl.cdiv(L, l_tile))

    out2d = pl.pallas_call(
        _bn_flat_kernel,
        out_shape=jax.ShapeDtypeStruct((N, L), dtype),
        grid_spec=pltpu.PrefetchScalarGridSpec(
            num_scalar_prefetch=0,
            grid=grid,
            in_specs=[
                pl.BlockSpec((2, l_tile), lambda i, j: (0, j)),
                pl.BlockSpec((n_tile, l_tile), lambda i, j: (i, j)),
            ],
            out_specs=pl.BlockSpec((n_tile, l_tile), lambda i, j: (i, j)),
        ),
        compiler_params=pltpu.CompilerParams(
            dimension_semantics=("parallel", "parallel"),
            vmem_limit_bytes=_vmem_limit(block_bytes, 8 * L)),
    )(params, x2d)
    return out2d.reshape(N, C, H, W)


# -------------------------------- reference / test ----------------------------


def _reference(x, weight, bias, running_mean, running_var):
    C = weight.shape[0]
    scale = (weight * jax.lax.rsqrt(running_var + _EPS)).reshape(1, C, 1, 1)
    shift = bias.reshape(1, C, 1, 1) - running_mean.reshape(1, C, 1, 1) * scale
    return x.astype(jnp.float32) * scale + shift


def _make_params(key, C):
    kw, kb, km, kv = jax.random.split(key, 4)
    weight = jnp.ones((C,), jnp.float32) + 0.1 * jax.random.normal(kw, (C,))
    bias = 0.1 * jax.random.normal(kb, (C,))
    running_mean = 0.1 * jax.random.normal(km, (C,))
    running_var = jnp.ones((C,), jnp.float32) + 0.1 * jnp.abs(
        jax.random.normal(kv, (C,)))
    return weight, bias, running_mean, running_var


if __name__ == "__main__":
    key = jax.random.PRNGKey(0)
    kx1, kx2, kx3, kx4, kp1, kp2 = jax.random.split(key, 6)

    # 1) Main shape from the module spec: (2, 4, 16, 16) f32 (channel path).
    w4 = _make_params(kp1, 4)
    x1 = jax.random.normal(kx1, (2, 4, 16, 16), dtype=jnp.float32)
    out1 = jax.block_until_ready(frozen_batch_norm_2d(x1, *w4))
    assert out1.shape == x1.shape and out1.dtype == x1.dtype
    assert jnp.allclose(out1, _reference(x1, *w4), atol=1e-5, rtol=1e-5)

    # 2) Small-HW path: HW = 100 < 128 (lane-dense flattened layout).
    x2 = jax.random.normal(kx2, (2, 4, 10, 10), dtype=jnp.float32)
    out2 = jax.block_until_ready(frozen_batch_norm_2d(x2, *w4))
    assert jnp.allclose(out2, _reference(x2, *w4), atol=1e-5, rtol=1e-5)

    # 3) HW >= 128 but not a multiple of 128: 128-multiple lane tile + masked tail.
    w8 = _make_params(kp2, 8)
    x3 = jax.random.normal(kx3, (1, 8, 13, 13), dtype=jnp.float32)
    out3 = jax.block_until_ready(frozen_batch_norm_2d(x3, *w8))
    assert jnp.allclose(out3, _reference(x3, *w8), atol=1e-5, rtol=1e-5)

    # 4) bf16 input, C aligned to bf16 sublane packing (16).
    w32 = _make_params(kp1, 32)
    x4 = jax.random.normal(kx4, (2, 32, 16, 16), dtype=jnp.bfloat16)
    out4 = jax.block_until_ready(frozen_batch_norm_2d(x4, *w32))
    assert out4.dtype == jnp.bfloat16
    assert jnp.allclose(out4.astype(jnp.float32), _reference(x4, *w32),
                        atol=3e-2, rtol=3e-2)

    print("KERNEL_OK")
</pallas_src>

<mosaic_0001>
module attributes {stable_mosaic.version = 11 : i64} {
  func.func @_bn_channel_kernel(%arg0: i32, %arg1: i32, %arg2: i32, %arg3: memref<2x4x1xf32, #tpu.memory_space<vmem>>, %arg4: memref<1x4x256xf32, #tpu.memory_space<vmem>>, %arg5: memref<1x4x256xf32, #tpu.memory_space<vmem>>) attributes {dimension_semantics = [#tpu.dimension_semantics<parallel>, #tpu.dimension_semantics<parallel>, #tpu.dimension_semantics<parallel>], iteration_bounds = array<i64: 2, 1, 1>, scalar_prefetch = 0 : i64, scratch_operands = 0 : i64, tpu.core_type = #tpu.core_type<tc>, window_params = [{transform_indices = @transform_0, window_bounds = array<i64: 2, 4, 1>}, {transform_indices = @transform_1, window_bounds = array<i64: 1, 4, 256>}, {transform_indices = @transform_2, window_bounds = array<i64: 1, 4, 256>}]} {
    %c0 = arith.constant 0 : index
    %c0_0 = arith.constant 0 : index
    %c0_1 = arith.constant 0 : index
    %0 = vector.load %arg3[%c0, %c0_0, %c0_1] : memref<2x4x1xf32, #tpu.memory_space<vmem>>, vector<1x4x1xf32>
    %1 = vector.shape_cast %0 : vector<1x4x1xf32> to vector<4x1xf32>
    %c1 = arith.constant 1 : index
    %c0_2 = arith.constant 0 : index
    %c0_3 = arith.constant 0 : index
    %2 = vector.load %arg3[%c1, %c0_2, %c0_3] : memref<2x4x1xf32, #tpu.memory_space<vmem>>, vector<1x4x1xf32>
    %3 = vector.shape_cast %2 : vector<1x4x1xf32> to vector<4x1xf32>
    %c0_4 = arith.constant 0 : index
    %c0_5 = arith.constant 0 : index
    %c0_6 = arith.constant 0 : index
    %4 = vector.load %arg4[%c0_4, %c0_5, %c0_6] : memref<1x4x256xf32, #tpu.memory_space<vmem>>, vector<1x4x256xf32>
    %5 = vector.shape_cast %1 : vector<4x1xf32> to vector<1x4x1xf32>
    %6 = vector.broadcast %5 : vector<1x4x1xf32> to vector<1x4x256xf32>
    %7 = arith.mulf %4, %6 : vector<1x4x256xf32>
    %8 = vector.shape_cast %3 : vector<4x1xf32> to vector<1x4x1xf32>
    %9 = vector.broadcast %8 : vector<1x4x1xf32> to vector<1x4x256xf32>
    %10 = arith.addf %7, %9 : vector<1x4x256xf32>
    %c0_7 = arith.constant 0 : index
    %c0_8 = arith.constant 0 : index
    %c0_9 = arith.constant 0 : index
    %11 = vector.load %arg5[%c0_7, %c0_8, %c0_9] : memref<1x4x256xf32, #tpu.memory_space<vmem>>, vector<1x4x256xf32>
    tpu.vector_store %arg5[%c0_7, %c0_8, %c0_9], %10 {strides = array<i32>} : memref<1x4x256xf32, #tpu.memory_space<vmem>>, vector<1x4x256xf32>,
    return
  }
  func.func @transform_0(%arg0: i32, %arg1: i32, %arg2: i32) -> (i32, i32, i32) {
    %c0_i32 = arith.constant 0 : i32
    %c0_i32_0 = arith.constant 0 : i32
    %c0_i32_1 = arith.constant 0 : i32
    return %c0_i32, %arg1, %c0_i32_0 : i32, i32, i32
  }
  func.func @transform_1(%arg0: i32, %arg1: i32, %arg2: i32) -> (i32, i32, i32) {
    %c0_i32 = arith.constant 0 : i32
    return %arg0, %arg1, %arg2 : i32, i32, i32
  }
  func.func @transform_2(%arg0: i32, %arg1: i32, %arg2: i32) -> (i32, i32, i32) {
    %c0_i32 = arith.constant 0 : i32
    return %arg0, %arg1, %arg2 : i32, i32, i32
  }
}

</mosaic_0001>

<bundles_post_ra>
// kernel: frozen_batch_norm_2d.1
= control target key start
LH: loop header
LB: loop body
LE: loop exit
PB: predicated region body
PF: predicated region fallthrough
CT: control target
= control target key end

     0   :  { %s472_s9 = smov 0   ;;  %s474_s10 = smov 0   ;;  %s511_s0 = inlined_call_operand.vmem [shape: f32[2,4,1], index: 0, kind: input, shape index: {}]   ;;  %s512_s1 = inlined_call_operand.vmem [shape: f32[2,4,256], index: 1, kind: input, shape index: {}]   ;;  %s513_s2 = inlined_call_operand.vmem [shape: f32[2,4,256], index: 2, kind: output, shape index: {}]  }
   0x1   :  { %s476_s11 = smov 0  }
   0x2 LB: > { %s31_s12 = sadd.s32 1, %s449_s10  ;;  %p394_p0 = scmp.ge.s32.totalorder %s453_s11, 1  ;;  %s453_s11 = sphi %s476_s11, %s12_s11   ;;  %s449_s10 = sphi %s474_s10, %s515_s10   ;;  %s445_s9 = sphi %s472_s9, %s514_s9  }
   0x3   : > { %p33_p1 = scmp.ge.s32.totalorder %s31_s12, 2  ;;  %p157_p2 = scmp.lt.s32.totalorder %s453_s11, 3 }
   0x5   : > { %s517_s12 = smov (%p33_p1, %s31_s12), 0  ;;  %p158_p3 = pnand %p394_p0, %p157_p2 }
   0x6   : > { %v231_v0 = vld [vmem:[%s511_s0] sm:$0xf] (!%p158_p3)  ;;  %v455_v1 = vmov (!%p158_p3), 0   ;;  %v399_v2 = vld [vmem:[%s511_s0 + $0x4] sm:$0xf] (!%p158_p3)  ;;  %p204_p4 = scmp.lt.s32.totalorder (!%p158_p3), %s445_s9, 1  ;;  %v242_v5 = vlaneseq (!%p158_p3) }
   0x7   : > { %161 = sbr.rel (%p158_p3) target bundleno = 145 (0x91), region = 28  ;;  %430 = vset.pattern.permute.xlu0 (!%p158_p3), %v455_v1  ;;  %v456_v3 = vmov (!%p158_p3), 839922192  }
   0x8   : > { %237 = vperm.xlu0 (!%p158_p3), %430, %v231_v0   ;;  %v240_v4 = vunpack.c.l.s4 (!%p158_p3), %v456_v3  ;;  %v243_v7 = vshrl.u32 (!%p158_p3), %v242_v5, 7 }
   0xa   : > { %v241_v6 = vunpack.c.0.s8 (!%p158_p3), %v240_v4 }
   0xc   : > { %250 = vperm.xlu0 (!%p158_p3), %430, %v399_v2   ;;  %v244_v8 = vsub.s32 (!%p158_p3), %v241_v6, %v243_v7 }
   0xe   : > { %s519_s9 = smov (!%p204_p4, %s445_s9), 1 }
   0xf   : > { %s402_s17 = sshll.u32 %s519_s9, 3 }
  0x10   : > { %s215_s20 = scalar_lea.vmem %s512_s1, %s402_s17  ;;  %s229_s23 = scalar_lea.vmem %s513_s2, %s402_s17 }
  0x11   : > { %v234_v11 = vld [vmem:[%s215_s20] sm:$0xff] }
  0x87   : > { %v238_v9 = vpop.permute.xlu0 %237 }
  0x88   : > { %v245_v10 = vrot.slane %v238_v9, %v244_v8 }
  0x8a   : > { %v247_v13 = vmul.f32 %v245_v10, %v234_v11 }
  0x8b   : > { %v251_v12 = vpop.permute.xlu0 %250 }
  0x8c   : > { %v258_v14 = vrot.slane %v251_v12, %v244_v8 }
  0x8e   : > { %v260_v15 = vadd.f32 %v258_v14, %v247_v13 }
  0x90   : > { %261 = vst [vmem:[%s229_s23] sm:$0xff] %v260_v15 }
  0x91 PF: > { %s12_s11 = sadd.s32 1, %s453_s11   ;;  %s514_s9 = smov %s449_s10 }
  0x92   : > { %p9_p5 = scmp.ge.s32.totalorder %s12_s11, 4   ;;  %s515_s10 = smov %s517_s12 }
  0x94   :  { %11 = sbr.rel (!%p9_p5) target bundleno = 2 (0x2), region = 62 }

</bundles_post_ra>
